<compile_context>
chip_gen: v6e
topology: v6e:2x2x1
jax: 0.10.0
libtpu: 0.0.40
codegen_flags: <defaults>
</compile_context>

<pallas_src>
import math
import functools

import jax
import jax.numpy as jnp
from jax.experimental import pallas as pl
from jax.experimental.pallas import tpu as pltpu


def _mha_mdam_kernel(*refs, n_heads, norm_factor, has_mask, last_one,
                     self_attn, approx_recip, compute_dtype):
    it = iter(refs)
    mask_ref = next(it) if has_mask else None
    q_ref = next(it)
    h_ref = None if self_attn else next(it)
    if self_attn:
        wqkv_ref = next(it)
    else:
        wq_ref = next(it)
        wkv_ref = next(it)
    wo_ref = next(it)
    out_ref = next(it)
    attn_ref = next(it) if last_one else None
    v_ref = next(it) if last_one else None

    bb, nq, D = q_ref.shape
    H = n_heads
    HD = H * D
    cdt = compute_dtype
    f32 = jnp.float32

    # ---- fused projections: 1 MXU matmul for self-attn, 2 otherwise ----
    q2 = q_ref[...].reshape(bb * nq, D)
    if self_attn:
        G = nq
        qkv = jnp.dot(q2, wqkv_ref[...], preferred_element_type=f32)    # (bb*nq, 3*HD)
        Qw = qkv[:, :HD]
        Kw = qkv[:, HD:2 * HD]
        Vw = qkv[:, 2 * HD:]
    else:
        G = h_ref.shape[1]
        h2 = h_ref[...].reshape(bb * G, D)
        Qw = jnp.dot(q2, wq_ref[...], preferred_element_type=f32)       # (bb*nq, HD)
        kv = jnp.dot(h2, wkv_ref[...], preferred_element_type=f32)      # (bb*G, 2*HD)
        Kw = kv[:, :HD]
        Vw = kv[:, HD:]

    if last_one:
        # Lane-dense (bb*G, HD) slab (HD is a multiple of 128) -> one store.
        v_ref[...] = Vw.astype(v_ref.dtype)

    # ---- stack heads along a LEADING axis (axis-0 concat, no lane relayout) ----
    Qc = Qw.astype(cdt).reshape(bb, nq, HD)
    Kc = Kw.astype(cdt).reshape(bb, G, HD)
    Vc = Vw.astype(cdt).reshape(bb, G, HD)
    Qs = jnp.concatenate([Qc[:, :, h * D:(h + 1) * D] for h in range(H)], axis=0)  # (H*bb, nq, D)
    Ks = jnp.concatenate([Kc[:, :, h * D:(h + 1) * D] for h in range(H)], axis=0)  # (H*bb, G, D)
    Vs = jnp.concatenate([Vc[:, :, h * D:(h + 1) * D] for h in range(H)], axis=0)  # (H*bb, G, D)

    # ---- scores for all heads in ONE batched MXU einsum ----
    compat = norm_factor * jnp.einsum('sqd,skd->sqk', Qs, Ks,
                                      preferred_element_type=f32)       # (H*bb, nq, G)

    if has_mask:
        mvals = mask_ref[...].astype(f32)                   # (bb, nq, G), 1.0 = masked
        bias = jnp.concatenate([mvals] * H, axis=0) * f32(-1e30)        # (H*bb, nq, G)
        compat = compat + bias

    # ---- softmax in f32 (exp underflows to exactly 0 for masked keys) ----
    m = jnp.max(compat, axis=-1, keepdims=True)
    p = jnp.exp(compat - m)
    s = jnp.sum(p, axis=-1, keepdims=True)
    attn = p * pl.reciprocal(s, approx=approx_recip)        # (H*bb, nq, G)

    if has_mask:
        # Rows with every key masked -> all-zero attention, matching the
        # reference's softmax(-inf) -> NaN -> attnc[mask]=0 behaviour.
        row_valid = 1.0 - jnp.min(mvals, axis=-1, keepdims=True)        # (bb, nq, 1)
        attn = attn * jnp.concatenate([row_valid] * H, axis=0)

    if last_one:
        # Single-shot store, already in the user-facing (H, B, nq, G) layout.
        # TODO(synk): for large graph_size, pad G wrapper-side to a multiple
        # of 128 (bias=-1e30 on the pad) to make this store fully unmasked.
        attn_ref[...] = attn.reshape(H, bb, nq, G).astype(attn_ref.dtype)

    # ---- P @ V for all heads in ONE batched MXU einsum ----
    heads = jnp.einsum('sqk,skd->sqd', attn.astype(cdt), Vs,
                       preferred_element_type=f32)          # (H*bb, nq, D)
    heads = heads.reshape(H, bb, nq, D)
    heads_cat = jnp.concatenate([heads[h] for h in range(H)], axis=-1)   # (bb, nq, HD)

    # ---- single fused output projection ----
    out = jnp.dot(heads_cat.reshape(bb * nq, HD).astype(cdt), wo_ref[...],
                  preferred_element_type=f32)
    # TODO(synk): out's lane width is only D (=32); presenting it as (bb, nq*D)
    # would make the store unmasked but needs a sublane->lane relayout — low
    # priority per the review, left as-is.
    out_ref[...] = out.astype(out_ref.dtype)


def _vmem_bytes_estimate(bb, nq, G, H, D, has_mask, last_one, self_attn,
                         c_isz, o_isz):
    """Rough per-grid-step VMEM footprint: double-buffered blocks + live temps."""
    HD = H * D
    io = bb * nq * D * c_isz                        # q block
    if not self_attn:
        io += bb * G * D * c_isz                    # h block
    if has_mask:
        io += bb * nq * G                           # int8 mask block
    io += 4 * D * HD * c_isz                        # fused projection + out weights
    io += bb * nq * D * o_isz                       # out block
    if last_one:
        io += H * bb * nq * G * 4                   # attn block (f32)
        io += bb * G * HD * 4                       # V block (f32)
    io *= 2                                         # BlockSpec double-buffering
    tmp = 4 * (bb * (nq + 2 * G) * HD               # Qw/Kw/Vw f32 accumulators
               + 3 * H * bb * nq * G                # compat / p / attn
               + 2 * bb * nq * HD)                  # heads + head concat
    tmp += c_isz * bb * (nq + 2 * G) * HD           # head-major compute-dtype copies
    return io + tmp


def _auto_batch_tile(B, nq, G, H, D, has_mask, last_one, self_attn,
                     c_isz, o_isz, budget_bytes):
    """Largest batch tile that fits the VMEM budget while keeping >=2 (ideally
    >=4) grid steps so v7x's 2 TensorCores both get work and DMA pipelines."""
    def aligned(bb):
        if B // bb == 1:
            return True
        if (bb * nq) % 8:
            return False
        if last_one and (bb * G) % 8:
            return False
        return True

    divisors = [d for d in range(1, B + 1) if B % d == 0]
    fitting = [d for d in divisors
               if aligned(d) and _vmem_bytes_estimate(
                   d, nq, G, H, D, has_mask, last_one, self_attn,
                   c_isz, o_isz) <= budget_bytes]
    if not fitting:
        return 1 if aligned(1) else B
    for min_steps in (4, 2, 1):
        cands = [d for d in fitting if B // d >= min_steps]
        if cands:
            return max(cands)
    return max(fitting)


def multi_head_attention_mdam(q, h, w_query, w_key, w_val, w_out, mask=None,
                              last_one=False, batch_tile=None,
                              approx_recip=False, compute_dtype=jnp.bfloat16,
                              vmem_budget_bytes=36 * 1024 * 1024):
    """JAX/Pallas equivalent of MultiHeadAttentionMDAM.forward."""
    self_attn = (h is None) or (h is q)
    if h is None:
        h = q
    H, D, D2 = w_query.shape
    assert D == D2
    B, nq, in_dim = q.shape
    G = h.shape[1]
    assert h.shape[0] == B and in_dim == D, "Wrong embedding dimension of input"
    HD = H * D
    norm_factor = 1.0 / math.sqrt(D)
    has_mask = mask is not None
    cdt = jnp.dtype(compute_dtype)
    c_isz = cdt.itemsize
    o_isz = jnp.dtype(q.dtype).itemsize

    # --- batch tiling (VMEM-aware, multi-step by default) ---
    if batch_tile is None:
        bb = _auto_batch_tile(B, nq, G, H, D, has_mask, last_one, self_attn,
                              c_isz, o_isz, vmem_budget_bytes)
    else:
        bb = int(batch_tile)
        assert B % bb == 0, "batch_tile must divide batch"
        if B // bb > 1:
            assert (bb * nq) % 8 == 0, "batch_tile * n_query must be a multiple of 8"
            if last_one:
                assert (bb * G) % 8 == 0, "batch_tile * graph_size must be a multiple of 8"
    n_tiles = B // bb
    # TODO(synk): for large n_query, add a second grid axis tiling the query
    # dimension (full key axis per step) to bound VMEM on v7x's 64 MiB.

    # --- fuse per-head weights into wide lane-dense matrices (pure layout) ---
    wq_wide = jnp.transpose(w_query, (1, 0, 2)).reshape(D, HD).astype(cdt)
    wk_wide = jnp.transpose(w_key, (1, 0, 2)).reshape(D, HD).astype(cdt)
    wv_wide = jnp.transpose(w_val, (1, 0, 2)).reshape(D, HD).astype(cdt)
    wo_wide = w_out.reshape(HD, D).astype(cdt)

    in_arrays, in_specs = [], []
    if has_mask:
        mask_i8 = (jnp.asarray(mask).reshape(B, nq, G) != 0).astype(jnp.int8)
        in_arrays.append(mask_i8)
        in_specs.append(pl.BlockSpec((bb, nq, G), lambda i: (i, 0, 0)))

    in_arrays.append(q.astype(cdt))
    in_specs.append(pl.BlockSpec((bb, nq, D), lambda i: (i, 0, 0)))
    if not self_attn:
        in_arrays.append(h.astype(cdt))
        in_specs.append(pl.BlockSpec((bb, G, D), lambda i: (i, 0, 0)))

    if self_attn:
        w_qkv = jnp.concatenate([wq_wide, wk_wide, wv_wide], axis=1)     # (D, 3*HD)
        in_arrays.append(w_qkv)
        in_specs.append(pl.BlockSpec((D, 3 * HD), lambda i: (0, 0)))
    else:
        w_kv = jnp.concatenate([wk_wide, wv_wide], axis=1)               # (D, 2*HD)
        in_arrays += [wq_wide, w_kv]
        in_specs += [pl.BlockSpec((D, HD), lambda i: (0, 0)),
                     pl.BlockSpec((D, 2 * HD), lambda i: (0, 0))]
    in_arrays.append(wo_wide)
    in_specs.append(pl.BlockSpec((HD, D), lambda i: (0, 0)))

    out_shapes = [jax.ShapeDtypeStruct((B * nq, D), q.dtype)]            # out slab
    out_specs = [pl.BlockSpec((bb * nq, D), lambda i: (i, 0))]
    if last_one:
        out_shapes += [
            jax.ShapeDtypeStruct((H, B, nq, G), jnp.float32),            # attn (final layout)
            jax.ShapeDtypeStruct((B * G, HD), jnp.float32),              # V, lane-dense slab
        ]
        out_specs += [
            pl.BlockSpec((H, bb, nq, G), lambda i: (0, i, 0, 0)),
            pl.BlockSpec((bb * G, HD), lambda i: (i, 0)),
        ]

    kernel = functools.partial(
        _mha_mdam_kernel, n_heads=H, norm_factor=norm_factor,
        has_mask=has_mask, last_one=last_one, self_attn=self_attn,
        approx_recip=approx_recip, compute_dtype=cdt)

    grid_spec = pltpu.PrefetchScalarGridSpec(
        num_scalar_prefetch=0,
        grid=(n_tiles,),
        in_specs=in_specs,
        out_specs=tuple(out_specs))

    results = pl.pallas_call(
        kernel,
        out_shape=tuple(out_shapes),
        grid_spec=grid_spec,
        compiler_params=pltpu.CompilerParams(
            dimension_semantics=("parallel",),          # batch tiles independent
            vmem_limit_bytes=48 * 1024 * 1024),          # > v5e's 16 MiB default, < v7x's 64 MiB
    )(*in_arrays)

    out = results[0].reshape(B, nq, D)
    if last_one:
        attn = results[1]                                                  # (H, B, nq, G)
        V = jnp.transpose(results[2].reshape(B, G, H, D), (2, 0, 1, 3))    # (H, B, G, D)
        return out, attn, V
    return out


def _reference(q, h, w_query, w_key, w_val, w_out, mask=None):
    """Pure-JAX reference mirroring the PyTorch forward."""
    D = q.shape[-1]
    norm = 1.0 / math.sqrt(D)
    Q = jnp.einsum('bqd,hde->hbqe', q, w_query)
    K = jnp.einsum('bkd,hde->hbke', h, w_key)
    V = jnp.einsum('bkd,hde->hbke', h, w_val)
    compat = norm * jnp.einsum('hbqe,hbke->hbqk', Q, K)
    if mask is not None:
        compat = jnp.where(mask[None], -jnp.inf, compat)
    attn = jax.nn.softmax(compat, axis=-1)
    if mask is not None:
        attn = jnp.where(mask[None], 0.0, attn)   # also zeroes fully-masked (NaN) rows
    heads = jnp.einsum('hbqk,hbke->hbqe', attn, V)
    out = jnp.einsum('hbqe,hef->bqf', heads, w_out)
    return out, attn, V


if __name__ == "__main__":
    embed_dim = 32
    n_heads = 4
    batch = 2
    graph_size = 8   # MDAM encoder path: h is q, so n_query == graph_size

    key = jax.random.PRNGKey(0)
    k_q, k_h, k_wq, k_wk, k_wv, k_wo, k_m = jax.random.split(key, 7)

    q = jax.random.normal(k_q, (batch, graph_size, embed_dim), jnp.float32)

    # nn.Parameter uniform_(-stdv, stdv), stdv = 1/sqrt(embed_dim).
    stdv = 1.0 / math.sqrt(embed_dim)
    shape_w = (n_heads, embed_dim, embed_dim)
    w_query = jax.random.uniform(k_wq, shape_w, jnp.float32, -stdv, stdv)
    w_key = jax.random.uniform(k_wk, shape_w, jnp.float32, -stdv, stdv)
    w_val = jax.random.uniform(k_wv, shape_w, jnp.float32, -stdv, stdv)
    w_out = jax.random.uniform(k_wo, shape_w, jnp.float32, -stdv, stdv)

    # --- 1) exact path (f32 MXU, exact reciprocal), self-attn, last_one=True ---
    out, attn, V = multi_head_attention_mdam(
        q, q, w_query, w_key, w_val, w_out,
        mask=None, last_one=True, approx_recip=False,
        compute_dtype=jnp.float32)
    jax.block_until_ready((out, attn, V))
    out_r, attn_r, v_r = _reference(q, q, w_query, w_key, w_val, w_out)
    assert jnp.allclose(out, out_r, rtol=1e-4, atol=1e-4), "out mismatch (exact)"
    assert jnp.allclose(attn, attn_r, rtol=1e-4, atol=1e-4), "attn mismatch (exact)"
    assert jnp.allclose(V, v_r, rtol=1e-4, atol=1e-4), "V mismatch (exact)"

    # --- 2) default fast path (bf16 MXU), masked incl. a fully-masked row ---
    mask = jax.random.bernoulli(k_m, 0.25, (batch, graph_size, graph_size))
    mask = mask.at[..., 0].set(False)     # keep >=1 valid key in most rows
    mask = mask.at[1, 3, :].set(True)     # one fully-masked row
    out_m, attn_m, V_m = multi_head_attention_mdam(
        q, q, w_query, w_key, w_val, w_out, mask=mask, last_one=True)
    jax.block_until_ready((out_m, attn_m, V_m))
    out_rm, attn_rm, v_rm = _reference(q, q, w_query, w_key, w_val, w_out, mask=mask)
    assert jnp.allclose(out_m, out_rm, rtol=3e-2, atol=3e-2), "masked out mismatch"
    assert jnp.allclose(attn_m, attn_rm, rtol=3e-2, atol=3e-2), "masked attn mismatch"
    assert jnp.allclose(V_m, v_rm, rtol=3e-2, atol=3e-2), "masked V mismatch"
    assert jnp.all(attn_m[:, 1, 3, :] == 0.0), "fully-masked attn row not zeroed"
    assert jnp.all(out_m[1, 3, :] == 0.0), "fully-masked out row not zeroed"

    # --- 3) cross-attention (h != q), bf16, last_one=False ---
    h_cross = jax.random.normal(k_h, (batch, 2 * graph_size, embed_dim), jnp.float32)
    out_c = multi_head_attention_mdam(q, h_cross, w_query, w_key, w_val, w_out,
                                      mask=None, last_one=False)
    jax.block_until_ready(out_c)
    out_rc, _, _ = _reference(q, h_cross, w_query, w_key, w_val, w_out)
    assert jnp.allclose(out_c, out_rc, rtol=3e-2, atol=3e-2), "cross-attn out mismatch"

    print("KERNEL_OK")
</pallas_src>

<mosaic_0001>
module attributes {stable_mosaic.version = 11 : i64} {
  func.func @_mha_mdam_kernel(%arg0: i32, %arg1: memref<1x8x32xf32, #tpu.memory_space<vmem>>, %arg2: memref<32x384xf32, #tpu.memory_space<vmem>>, %arg3: memref<128x32xf32, #tpu.memory_space<vmem>>, %arg4: memref<8x32xf32, #tpu.memory_space<vmem>>, %arg5: memref<4x1x8x8xf32, #tpu.memory_space<vmem>>, %arg6: memref<8x128xf32, #tpu.memory_space<vmem>>) attributes {dimension_semantics = [#tpu.dimension_semantics<parallel>], iteration_bounds = array<i64: 2>, scalar_prefetch = 0 : i64, scratch_operands = 0 : i64, tpu.core_type = #tpu.core_type<tc>, window_params = [{transform_indices = @transform_0, window_bounds = array<i64: 1, 8, 32>}, {pipeline_mode = #tpu.pipeline_mode<synchronous>, transform_indices = @transform_1, window_bounds = array<i64: 32, 384>}, {pipeline_mode = #tpu.pipeline_mode<synchronous>, transform_indices = @transform_2, window_bounds = array<i64: 128, 32>}, {transform_indices = @transform_3, window_bounds = array<i64: 8, 32>}, {transform_indices = @transform_4, window_bounds = array<i64: 4, 1, 8, 8>}, {transform_indices = @transform_5, window_bounds = array<i64: 8, 128>}]} {
    %c0 = arith.constant 0 : index
    %c0_0 = arith.constant 0 : index
    %c0_1 = arith.constant 0 : index
    %0 = vector.load %arg1[%c0, %c0_0, %c0_1] : memref<1x8x32xf32, #tpu.memory_space<vmem>>, vector<1x8x32xf32>
    %1 = vector.shape_cast %0 : vector<1x8x32xf32> to vector<8x32xf32>
    %c0_2 = arith.constant 0 : index
    %c0_3 = arith.constant 0 : index
    %2 = vector.load %arg2[%c0_2, %c0_3] : memref<32x384xf32, #tpu.memory_space<vmem>>, vector<32x384xf32>
    %cst = arith.constant dense<0.000000e+00> : vector<8x384xf32>
    %3 = tpu.matmul %1, %2, %cst {dimension_numbers = #tpu.dot_dimension_numbers<[1], [0], [0], [1], [0, 0, 1, 1], [], []>} : vector<8x32xf32>, vector<32x384xf32>, vector<8x384xf32> -> vector<8x384xf32>
    %4 = vector.extract_strided_slice %3 {offsets = [0, 0], sizes = [8, 128], strides = [1, 1]} : vector<8x384xf32> to vector<8x128xf32>
    %5 = vector.extract_strided_slice %3 {offsets = [0, 128], sizes = [8, 128], strides = [1, 1]} : vector<8x384xf32> to vector<8x128xf32>
    %6 = vector.extract_strided_slice %3 {offsets = [0, 256], sizes = [8, 128], strides = [1, 1]} : vector<8x384xf32> to vector<8x128xf32>
    %c0_4 = arith.constant 0 : index
    %c0_5 = arith.constant 0 : index
    %7 = vector.load %arg6[%c0_4, %c0_5] : memref<8x128xf32, #tpu.memory_space<vmem>>, vector<8x128xf32>
    tpu.vector_store %arg6[%c0_4, %c0_5], %6 {strides = array<i32>} : memref<8x128xf32, #tpu.memory_space<vmem>>, vector<8x128xf32>,
    %8 = vector.shape_cast %4 : vector<8x128xf32> to vector<1x8x128xf32>
    %9 = vector.shape_cast %5 : vector<8x128xf32> to vector<1x8x128xf32>
    %10 = vector.shape_cast %6 : vector<8x128xf32> to vector<1x8x128xf32>
    %11 = vector.extract_strided_slice %8 {offsets = [0, 0, 0], sizes = [1, 8, 32], strides = [1, 1, 1]} : vector<1x8x128xf32> to vector<1x8x32xf32>
    %12 = vector.extract_strided_slice %8 {offsets = [0, 0, 32], sizes = [1, 8, 32], strides = [1, 1, 1]} : vector<1x8x128xf32> to vector<1x8x32xf32>
    %13 = vector.extract_strided_slice %8 {offsets = [0, 0, 64], sizes = [1, 8, 32], strides = [1, 1, 1]} : vector<1x8x128xf32> to vector<1x8x32xf32>
    %14 = vector.extract_strided_slice %8 {offsets = [0, 0, 96], sizes = [1, 8, 32], strides = [1, 1, 1]} : vector<1x8x128xf32> to vector<1x8x32xf32>
    %15 = tpu.concatenate %11, %12, %13, %14 in 0 : vector<1x8x32xf32>, vector<1x8x32xf32>, vector<1x8x32xf32>, vector<1x8x32xf32> -> vector<4x8x32xf32>
    %16 = vector.extract_strided_slice %9 {offsets = [0, 0, 0], sizes = [1, 8, 32], strides = [1, 1, 1]} : vector<1x8x128xf32> to vector<1x8x32xf32>
    %17 = vector.extract_strided_slice %9 {offsets = [0, 0, 32], sizes = [1, 8, 32], strides = [1, 1, 1]} : vector<1x8x128xf32> to vector<1x8x32xf32>
    %18 = vector.extract_strided_slice %9 {offsets = [0, 0, 64], sizes = [1, 8, 32], strides = [1, 1, 1]} : vector<1x8x128xf32> to vector<1x8x32xf32>
    %19 = vector.extract_strided_slice %9 {offsets = [0, 0, 96], sizes = [1, 8, 32], strides = [1, 1, 1]} : vector<1x8x128xf32> to vector<1x8x32xf32>
    %20 = tpu.concatenate %16, %17, %18, %19 in 0 : vector<1x8x32xf32>, vector<1x8x32xf32>, vector<1x8x32xf32>, vector<1x8x32xf32> -> vector<4x8x32xf32>
    %21 = vector.extract_strided_slice %10 {offsets = [0, 0, 0], sizes = [1, 8, 32], strides = [1, 1, 1]} : vector<1x8x128xf32> to vector<1x8x32xf32>
    %22 = vector.extract_strided_slice %10 {offsets = [0, 0, 32], sizes = [1, 8, 32], strides = [1, 1, 1]} : vector<1x8x128xf32> to vector<1x8x32xf32>
    %23 = vector.extract_strided_slice %10 {offsets = [0, 0, 64], sizes = [1, 8, 32], strides = [1, 1, 1]} : vector<1x8x128xf32> to vector<1x8x32xf32>
    %24 = vector.extract_strided_slice %10 {offsets = [0, 0, 96], sizes = [1, 8, 32], strides = [1, 1, 1]} : vector<1x8x128xf32> to vector<1x8x32xf32>
    %25 = tpu.concatenate %21, %22, %23, %24 in 0 : vector<1x8x32xf32>, vector<1x8x32xf32>, vector<1x8x32xf32>, vector<1x8x32xf32> -> vector<4x8x32xf32>
    "tpu.trace_start"() <{level = 10 : i32, message = "sqd,skd->sqk"}> : () -> ()
    %cst_6 = arith.constant dense<0.000000e+00> : vector<4x8x8xf32>
    %26 = tpu.matmul %15, %20, %cst_6 {dimension_numbers = #tpu.dot_dimension_numbers<[2], [2], [1], [1], [0, 0, 0, 1, 1, 1], [0], [0]>} : vector<4x8x32xf32>, vector<4x8x32xf32>, vector<4x8x8xf32> -> vector<4x8x8xf32>
    "tpu.trace_stop"() : () -> ()
    %cst_7 = arith.constant 0.176776692 : f32
    %27 = vector.broadcast %cst_7 : f32 to vector<4x8x8xf32>
    %28 = arith.mulf %27, %26 : vector<4x8x8xf32>
    %cst_8 = arith.constant dense<0xFF800000> : vector<4x8xf32>
    %29 = vector.multi_reduction <maximumf>, %28, %cst_8 [2] : vector<4x8x8xf32> to vector<4x8xf32>
    %30 = vector.shape_cast %29 : vector<4x8xf32> to vector<4x8x1xf32>
    %31 = vector.broadcast %30 : vector<4x8x1xf32> to vector<4x8x8xf32>
    %32 = arith.subf %28, %31 : vector<4x8x8xf32>
    %33 = math.exp %32 : vector<4x8x8xf32>
    %cst_9 = arith.constant dense<0.000000e+00> : vector<4x8xf32>
    %34 = vector.multi_reduction <add>, %33, %cst_9 [2] : vector<4x8x8xf32> to vector<4x8xf32>
    %35 = vector.shape_cast %34 : vector<4x8xf32> to vector<4x8x1xf32>
    %36 = tpu.reciprocal %35 : vector<4x8x1xf32> -> vector<4x8x1xf32>
    %37 = vector.broadcast %36 : vector<4x8x1xf32> to vector<4x8x8xf32>
    %38 = arith.mulf %33, %37 : vector<4x8x8xf32>
    %39 = vector.shape_cast %38 : vector<4x8x8xf32> to vector<4x1x8x8xf32>
    %c0_10 = arith.constant 0 : index
    %c0_11 = arith.constant 0 : index
    %c0_12 = arith.constant 0 : index
    %c0_13 = arith.constant 0 : index
    %40 = vector.load %arg5[%c0_10, %c0_11, %c0_12, %c0_13] : memref<4x1x8x8xf32, #tpu.memory_space<vmem>>, vector<4x1x8x8xf32>
    tpu.vector_store %arg5[%c0_10, %c0_11, %c0_12, %c0_13], %39 {strides = array<i32>} : memref<4x1x8x8xf32, #tpu.memory_space<vmem>>, vector<4x1x8x8xf32>,
    "tpu.trace_start"() <{level = 10 : i32, message = "sqk,skd->sqd"}> : () -> ()
    %cst_14 = arith.constant dense<0.000000e+00> : vector<4x8x32xf32>
    %41 = tpu.matmul %38, %25, %cst_14 {dimension_numbers = #tpu.dot_dimension_numbers<[2], [1], [1], [2], [0, 0, 0, 1, 1, 2], [0], [0]>} : vector<4x8x8xf32>, vector<4x8x32xf32>, vector<4x8x32xf32> -> vector<4x8x32xf32>
    "tpu.trace_stop"() : () -> ()
    %42 = vector.shape_cast %41 : vector<4x8x32xf32> to vector<4x1x8x32xf32>
    %43 = vector.extract_strided_slice %42 {offsets = [0, 0, 0, 0], sizes = [1, 1, 8, 32], strides = [1, 1, 1, 1]} : vector<4x1x8x32xf32> to vector<1x1x8x32xf32>
    %44 = vector.shape_cast %43 : vector<1x1x8x32xf32> to vector<1x8x32xf32>
    %45 = vector.extract_strided_slice %42 {offsets = [1, 0, 0, 0], sizes = [1, 1, 8, 32], strides = [1, 1, 1, 1]} : vector<4x1x8x32xf32> to vector<1x1x8x32xf32>
    %46 = vector.shape_cast %45 : vector<1x1x8x32xf32> to vector<1x8x32xf32>
    %47 = vector.extract_strided_slice %42 {offsets = [2, 0, 0, 0], sizes = [1, 1, 8, 32], strides = [1, 1, 1, 1]} : vector<4x1x8x32xf32> to vector<1x1x8x32xf32>
    %48 = vector.shape_cast %47 : vector<1x1x8x32xf32> to vector<1x8x32xf32>
    %49 = vector.extract_strided_slice %42 {offsets = [3, 0, 0, 0], sizes = [1, 1, 8, 32], strides = [1, 1, 1, 1]} : vector<4x1x8x32xf32> to vector<1x1x8x32xf32>
    %50 = vector.shape_cast %49 : vector<1x1x8x32xf32> to vector<1x8x32xf32>
    %51 = tpu.concatenate %44, %46, %48, %50 in 2 : vector<1x8x32xf32>, vector<1x8x32xf32>, vector<1x8x32xf32>, vector<1x8x32xf32> -> vector<1x8x128xf32>
    %52 = vector.shape_cast %51 : vector<1x8x128xf32> to vector<8x128xf32>
    %c0_15 = arith.constant 0 : index
    %c0_16 = arith.constant 0 : index
    %53 = vector.load %arg3[%c0_15, %c0_16] : memref<128x32xf32, #tpu.memory_space<vmem>>, vector<128x32xf32>
    %cst_17 = arith.constant dense<0.000000e+00> : vector<8x32xf32>
    %54 = tpu.matmul %52, %53, %cst_17 {dimension_numbers = #tpu.dot_dimension_numbers<[1], [0], [0], [1], [0, 0, 1, 1], [], []>} : vector<8x128xf32>, vector<128x32xf32>, vector<8x32xf32> -> vector<8x32xf32>
    %c0_18 = arith.constant 0 : index
    %c0_19 = arith.constant 0 : index
    %55 = vector.load %arg4[%c0_18, %c0_19] : memref<8x32xf32, #tpu.memory_space<vmem>>, vector<8x32xf32>
    tpu.vector_store %arg4[%c0_18, %c0_19], %54 {strides = array<i32>} : memref<8x32xf32, #tpu.memory_space<vmem>>, vector<8x32xf32>,
    return
  }
  func.func @transform_0(%arg0: i32) -> (i32, i32, i32) {
    %c0_i32 = arith.constant 0 : i32
    %c0_i32_0 = arith.constant 0 : i32
    %c0_i32_1 = arith.constant 0 : i32
    return %arg0, %c0_i32, %c0_i32_0 : i32, i32, i32
  }
  func.func @transform_1(%arg0: i32) -> (i32, i32) {
    %c0_i32 = arith.constant 0 : i32
    %c0_i32_0 = arith.constant 0 : i32
    %c0_i32_1 = arith.constant 0 : i32
    return %c0_i32, %c0_i32_0 : i32, i32
  }
  func.func @transform_2(%arg0: i32) -> (i32, i32) {
    %c0_i32 = arith.constant 0 : i32
    %c0_i32_0 = arith.constant 0 : i32
    %c0_i32_1 = arith.constant 0 : i32
    return %c0_i32, %c0_i32_0 : i32, i32
  }
  func.func @transform_3(%arg0: i32) -> (i32, i32) {
    %c0_i32 = arith.constant 0 : i32
    %c0_i32_0 = arith.constant 0 : i32
    return %arg0, %c0_i32 : i32, i32
  }
  func.func @transform_4(%arg0: i32) -> (i32, i32, i32, i32) {
    %c0_i32 = arith.constant 0 : i32
    %c0_i32_0 = arith.constant 0 : i32
    %c0_i32_1 = arith.constant 0 : i32
    %c0_i32_2 = arith.constant 0 : i32
    return %c0_i32, %arg0, %c0_i32_0, %c0_i32_1 : i32, i32, i32, i32
  }
  func.func @transform_5(%arg0: i32) -> (i32, i32) {
    %c0_i32 = arith.constant 0 : i32
    %c0_i32_0 = arith.constant 0 : i32
    return %arg0, %c0_i32 : i32, i32
  }
}

</mosaic_0001>

<bundles_post_ra>
// kernel: tpu_custom_call.1
= control target key start
LH: loop header
LB: loop body
LE: loop exit
PB: predicated region body
PF: predicated region fallthrough
CT: control target
= control target key end

     0   :  { %11 = vsyncpa [#allocation3], 0  ;;  %s2079_s0 = inlined_call_operand.vmem [shape: f32[2,8,32], index: 0, kind: input, shape index: {}]   ;;  %s2080_s1 = inlined_call_operand.vmem [shape: f32[32,384], index: 1, kind: input, shape index: {}]   ;;  %s2081_s2 = inlined_call_operand.vmem [shape: f32[128,32], index: 2, kind: input, shape index: {}]   ;;  %s2082_s3 = inlined_call_operand.hbm [shape: f32[16,32], index: 3, kind: output, shape index: {0}]   ;;  %s2083_s4 = inlined_call_operand.hbm [shape: f32[4,2,8,8], index: 4, kind: output, shape index: {1}]   ;;  %s2084_s5 = inlined_call_operand.hbm [shape: f32[16,128], index: 5, kind: output, shape index: {2}]  }
   0x1   :  { %13 = vsyncpa [#allocation3 + $0x1], 0 }
   0x2   :  { %14 = vsyncpa [#allocation5], 0 }
   0x3   :  { %16 = vsyncpa [#allocation5 + $0x1], 0  ;;  %s1724_s18 = smov 0   ;;  %s1726_s19 = smov 0  }
   0x4   :  { %s1728_s20 = smov 0   ;;  %s1730_s21 = smov 0  }
   0x5 LB: > { %s1745_s22 = sadd.s32 4294967295, %s1681_s21   ;;  %s2085_s23 = sadd.s32 4294967294, %s1681_s21   ;;  %s1681_s21 = sphi %s1730_s21, %s2094_s21   ;;  %s1677_s20 = sphi %s1728_s20, %s2093_s20   ;;  %s1673_s19 = sphi %s1726_s19, %s2092_s19   ;;  %s1669_s18 = sphi %s1724_s18, %s2091_s18  }
   0x6   : > { %s1749_s24 = sadd.s32 1, %s1681_s21   ;;  %s97_s25 = sadd.s32 1, %s1677_s20 }
   0x7   : > { %s94_s26 = ssub.s32 %s1681_s21, %s1749_s24  ;;  %p107_p0 = scmp.ne.s32.totalorder %s1677_s20, %s1673_s19 }
   0x8   : > { %p95_p1 = scmp.eq.s32.totalorder %s94_s26, 0  ;;  %p108_p2 = scmp.eq.s32.totalorder %s1745_s22, 1 }
   0x9   : > { %p113_p3 = scmp.ne.s32.totalorder %s1673_s19, %s1669_s18  ;;  %p114_p4 = scmp.eq.s32.totalorder %s2085_s23, 1 }
   0xa   : > { %s1762_s27 = scalar_select %p95_p1, %s1677_s20, %s97_s25  }
   0xb   : > { %p1764_p5 = por %p108_p2, %p107_p0  ;;  %p1768_p6 = por %p114_p4, %p113_p3 }
   0xc   : > { %p1341_p7 = scmp.ge.s32.totalorder %s1681_s21, 1  ;;  %p197_p8 = scmp.lt.s32.totalorder %s1681_s21, 3 }
   0xe   : > { %p198_p9 = pnand %p1341_p7, %p197_p8 }
   0xf   : > { %p234_p10 = scmp.lt.s32.totalorder (!%p198_p9), %s1745_s22, 1  ;;  %s1685_s26 = smov (!%p198_p9), 64  }
  0x10   : > { %201 = sbr.rel (%p198_p9) target bundleno = 1376 (0x560), region = 32  ;;  %s1687_s6 = smov (!%p198_p9), 32  }
  0x11   : > { %s1861_s7 = sand.u32 (!%p198_p9), 1, %s1673_s19   ;;  %s1171_s12 = sand.u32 (!%p198_p9), 1, %s1745_s22  }
  0x12   : > { %s2086_s8 = sshll.u32 (!%p198_p9), %s1861_s7, 3 }
  0x13   : > { %s1866_s9 = scalar_lea.vmem (!%p198_p9), [#allocation6], %s2086_s8 }
  0x15   : > { %v249_v0 = vld [vmem:[%s2080_s1 + $0x50] sm:$0xff]  ;;  %v248_v1 = vld [vmem:[%s2080_s1 + $0x48] sm:$0xff]  ;;  %v246_v2 = vld [vmem:[%s2080_s1 + $0x38] sm:$0xff]  ;;  %v1683_v4 = vmov 0.0   ;;  %s235_s15 = scalar_select %p234_p10, %s1745_s22, 1  ;;  %vm251_vm0 = vcmask 261120  }
  0x16   : > { %279 = vmatprep.subr.mxu1 %v249_v0  ;;  %v245_v3 = vld [vmem:[%s2080_s1 + $0x30] sm:$0xff]  ;;  %319 = vmatprep.mubr.f32.mxu1 %v1683_v4  ;;  %v243_v5 = vld [vmem:[%s2080_s1 + $0x20] sm:$0xff]  ;;  %v242_v6 = vld [vmem:[%s2080_s1 + $0x18] sm:$0xff]  ;;  %vm1684_vm1 = vmmov 0   ;;  %vm721_vm2 = vcmask 64512   ;;  %vm1075_vm3 = vcmask 523264  }
  0x17   : > { %280 = vmatpush1.msra.mxu1 %v248_v1  ;;  %1437 = vmatprep.subr.mxu0 %v1683_v4  ;;  %v240_v7 = vld [vmem:[%s2080_s1 + $0x8] sm:$0xff]  ;;  %s1345_s30 = sshll.u32 %s235_s15, 3  ;;  %v239_v8 = vld [vmem:[%s2080_s1] sm:$0xff]  ;;  %v250_v10 = vld [vmem:[%s2080_s1 + $0x58] sm:$0xff]  ;;  %vm1077_vm4 = vcmask 785408   ;;  %s1987_s15 = scalar_lea.sflag [#allocation5], %s1171_s12 }
  0x18   : > { %281 = vmatprep.subr.mxu1 %v246_v2  ;;  %s237_s10 = scalar_lea.vmem %s2079_s0, %s1345_s30  ;;  %v247_v11 = vld [vmem:[%s2080_s1 + $0x40] sm:$0xff]  ;;  %v244_v12 = vld [vmem:[%s2080_s1 + $0x28] sm:$0xff]  ;;  %v241_v13 = vld [vmem:[%s2080_s1 + $0x10] sm:$0xff]  ;;  %1439 = vmatprep.mubr.msk.f32.mxu0 %vm1684_vm1, %v1683_v4  ;;  %s1686_s30 = smov 96  }
  0x19   : > { %282 = vmatpush1.msra.mxu1 %v245_v3  ;;  %v238_v9 = vld [vmem:[%s237_s10] sm:$0xff]  ;;  %s1343_s10 = sshll.u32 %s1861_s7, 5 }
  0x1a   : > { %283 = vmatprep.subr.mxu1 %v243_v5  ;;  %s1887_s11 = scalar_lea.vmem [#allocation4], %s1343_s10 }
  0x1b   : > { %284 = vmatpush1.msra.mxu1 %v242_v6 }
  0x1c   : > { %285 = vmatprep.subr.mxu1 %v240_v7 }
  0x1d   : > { %286 = vmatpush1.msra.mxu1 %v239_v8 }
  0x1e   : > { %1346 = vmatmul.mubr.msk.f32.vlgmr.msra.gmra.mxu1 %vm251_vm0, %v238_v9  ;;  %1406 = vmatprep.subr.mxu1 %v1683_v4 }
  0x1f   : > { %1407 = vmatpush3.msra.mxu1 %v250_v10  ;;  %1414 = vmatprep.mubr.msk.f32.mxu1 %vm1684_vm1, %v1683_v4 }
  0x20   : > { %1408 = vmatprep.subr.mxu1 %v1683_v4 }
  0x21   : > { %1409 = vmatpush3.msra.mxu1 %v247_v11 }
  0x22   : > { %1410 = vmatprep.subr.mxu1 %v1683_v4 }
  0x23   : > { %1411 = vmatpush3.msra.mxu1 %v244_v12  ;;  %v1094_v12 = vld [vmem:[%s2081_s2 + $0x78] sm:$0xff] }
  0x24   : > { %1412 = vmatprep.subr.mxu1 %v1683_v4 }
  0x25   : > { %1413 = vmatpush3.msra.mxu1 %v241_v13  ;;  %v1093_v13 = vld [vmem:[%s2081_s2 + $0x70] sm:$0xff] }
  0x26   : > { %1415 = vmatmul.mubr.msk.f32.vlgmr.msra.gmra.mxu1 %vm251_vm0, %v238_v9  ;;  %1417 = vmatprep.subr.mxu1 %v1683_v4 }
  0x27   : > { %1419 = vmatprep.mubr.msk.f32.mxu1 %vm1684_vm1, %v1683_v4 }
  0xde   : > { %v321_v14 = vpop.f32.mrf.mxu1 }
  0xe0   : > { %v323_v15 = vpop.f32.mrf.mxu1 }
  0xe1   : > { %407 = vrot.lane.b32.xlu1 %v323_v15, %s1685_s26  ;;  %405 = vrot.lane.b32.xlu0 %v323_v15, %s1686_s30 }
  0xe2   : > { %1418 = vmatpush3.xpose.msk.msra.mxu1 %vm251_vm0, %v323_v15 }
  0xe3   : > { %1422 = vmatprep.subr.mxu1 %v1683_v4 }
  0xe5   : > { %1420 = vmatmul.mubr.msk.f32.vlgmr.msra.gmra.mxu1 %vm251_vm0, %v321_v14  ;;  %400 = vrot.lane.b32.xlu1 %v321_v14, %s1685_s26 }
  0xe6   : > { %398 = vrot.lane.b32.xlu0 %v321_v14, %s1686_s30  ;;  %1424 = vmatprep.mubr.msk.f32.mxu1 %vm1684_vm1, %v1683_v4  ;;  %v1841_v16 = vpop.f32.mrf.mxu1 }
  0xe7   : > { %1438 = vmatpush3.msra.mxu0 %v1841_v16  ;;  %396 = vst [vmem:[%s1866_s9] sm:$0xff] %v1841_v16 }
  0xe8   : > { %v1416_v17 = vpop.f32.mrf.mxu1  ;;  %1447 = vmatprep.subr.mxu0 %v1683_v4 }
  0xe9   : > { %402 = vrot.lane.b32.xlu1 %v321_v14, %s1687_s6  ;;  %v1092_v14 = vld [vmem:[%s2081_s2 + $0x68] sm:$0xff]  ;;  %v1089_v17 = vld [vmem:[%s2081_s2 + $0x50] sm:$0xff] }
  0xea   : > { %409 = vrot.lane.b32.xlu0 %v323_v15, %s1687_s6  ;;  %v1091_v15 = vld [vmem:[%s2081_s2 + $0x60] sm:$0xff] }
 0x153   : > { %v406_v18 = vpop.permute.xlu0 %405  ;;  %v408_v19 = vpop.permute.xlu1 %407 }
 0x154   : > { %1423 = vmatpush3.xpose.msk.msra.mxu1 %vm251_vm0, %v406_v18  ;;  %v1088_v18 = vld [vmem:[%s2081_s2 + $0x48] sm:$0xff] }
 0x155   : > { %1427 = vmatprep.subr.mxu1 %v1683_v4 }
 0x157   : > { %v401_v21 = vpop.permute.xlu1 %400 }
 0x158   : > { %v399_v20 = vpop.permute.xlu0 %398 }
 0x159   : > { %1425 = vmatmul.mubr.msk.f32.vlgmr.msra.gmra.mxu1 %vm251_vm0, %v399_v20 }
 0x15a   : > { %1428 = vmatpush3.xpose.msk.msra.mxu1 %vm251_vm0, %v408_v19  ;;  %1429 = vmatprep.mubr.msk.f32.mxu1 %vm1684_vm1, %v1683_v4  ;;  %v1087_v19 = vld [vmem:[%s2081_s2 + $0x40] sm:$0xff] }
 0x15b   : > { %1432 = vmatprep.subr.mxu1 %v1683_v4  ;;  %v403_v23 = vpop.permute.xlu1 %402 }
 0x15c   : > { %v410_v22 = vpop.permute.xlu0 %409 }
 0x15d   : > { %1430 = vmatmul.mubr.msk.f32.vlgmr.msra.gmra.mxu1 %vm251_vm0, %v401_v21  ;;  %v1086_v21 = vld [vmem:[%s2081_s2 + $0x38] sm:$0xff] }
 0x15e   : > { %1433 = vmatpush3.xpose.msk.msra.mxu1 %vm251_vm0, %v410_v22  ;;  %1434 = vmatprep.mubr.msk.f32.mxu1 %vm1684_vm1, %v1683_v4 }
 0x15f   : > { %1442 = vmatprep.subr.mxu1 %v1683_v4 }
 0x161   : > { %1435 = vmatmul.mubr.msk.f32.vlgmr.msra.gmra.mxu1 %vm251_vm0, %v403_v23  ;;  %v1085_v23 = vld [vmem:[%s2081_s2 + $0x30] sm:$0xff] }
 0x162   : > { %1444 = vmatprep.mubr.msk.f32.mxu1 %vm1684_vm1, %v1683_v4 }
 0x1a5   : > { %v491_v24 = vpop.f32.mrf.mxu1 }
 0x1a6   : > { %v717_v25 = vmul.f32 0.17677669, %v491_v24  ;;  %v1084_v24 = vld [vmem:[%s2081_s2 + $0x28] sm:$0xff] }
 0x1a7   : > { %v1421_v26 = vpop.f32.mrf.mxu1 }
 0x1a8   : > { %v722_v27 = vsel %vm721_vm2, %v717_v25, -inf  ;;  %v1082_v26 = vld [vmem:[%s2081_s2 + $0x18] sm:$0xff] }
 0x1a9   : > { %723 = vmax.xlane.f32.xlu0 %v722_v27  ;;  %v1081_v27 = vld [vmem:[%s2081_s2 + $0x10] sm:$0xff] }
 0x219   : > { %v565_v28 = vpop.f32.mrf.mxu1 }
 0x21a   : > { %v718_v29 = vmul.f32 0.17677669, %v565_v28  ;;  %v1080_v28 = vld [vmem:[%s2081_s2 + $0x8] sm:$0xff] }
 0x21b   : > { %v1426_v30 = vpop.f32.mrf.mxu1 }
 0x21c   : > { %v725_v31 = vsel %vm721_vm2, %v718_v29, -inf }
 0x21d   : > { %726 = vmax.xlane.f32.xlu1 %v725_v31  ;;  %v639_v32 = vpop.f32.mrf.mxu1 }
 0x21e   : > { %v719_v33 = vmul.f32 0.17677669, %v639_v32 }
 0x21f   : > { %v1431_v34 = vpop.f32.mrf.mxu1 }
 0x220   : > { %v728_v35 = vsel %vm721_vm2, %v719_v33, -inf }
 0x221   : > { %729 = vmax.xlane.f32.xlu0 %v728_v35  ;;  %v713_v36 = vpop.f32.mrf.mxu1 }
 0x222   : > { %v720_v37 = vmul.f32 0.17677669, %v713_v36 }
 0x223   : > { %v1436_v38 = vpop.f32.mrf.mxu1 }
 0x224   : > { %v731_v39 = vsel %vm721_vm2, %v720_v37, -inf }
 0x225   : > { %732 = vmax.xlane.f32.xlu0 %v731_v39 }
 0x22e   : > { %412 = vrot.lane.b32.xlu1 %v1841_v16, %s1686_s30 }
 0x232   : > { %v724_v40 = vpop.xlane.xlu0 %723 }
 0x233   : > { %v734_v41 = vsub.f32 %v717_v25, %v724_v40  ;;  %v1083_v25 = vld [vmem:[%s2081_s2 + $0x20] sm:$0xff] }
 0x235   : > { %v738_v42 = vmul.f32 1.442695, %v734_v41 }
 0x237   : > { %1549 = vpow2.f32 %v738_v42 }
 0x244   : > { %v1550_v43 = vpop.eup %1549 }
 0x245   : > { %v746_v44 = vsel %vm721_vm2, %v1550_v43, 0.0 }
 0x252   : > { %747 = vadd.xlane.f32.xlu1 %v746_v44 }
 0x2a6   : > { %v727_v45 = vpop.xlane.xlu1 %726 }
 0x2a7   : > { %v735_v46 = vsub.f32 %v718_v29, %v727_v45  ;;  %v1079_v29 = vld [vmem:[%s2081_s2] sm:$0xff] }
 0x2a9   : > { %v740_v47 = vmul.f32 1.442695, %v735_v46 }
 0x2aa   : > { %v413_v48 = vpop.permute.xlu1 %412  ;;  %v730_v49 = vpop.xlane.xlu0 %729 }
 0x2ab   : > { %1551 = vpow2.f32 %v740_v47  ;;  %v736_v50 = vsub.f32 %v719_v33, %v730_v49  ;;  %1443 = vmatpush3.msra.mxu1 %v413_v48 }
 0x2ac   : > { %1452 = vmatprep.subr.mxu1 %v1683_v4 }
 0x2ad   : > { %v742_v51 = vmul.f32 1.442695, %v736_v50 }
 0x2ae   : > { %v733_v52 = vpop.xlane.xlu0 %732 }
 0x2af   : > { %1553 = vpow2.f32 %v742_v51  ;;  %v737_v53 = vsub.f32 %v720_v37, %v733_v52 }
 0x2b1   : > { %v744_v54 = vmul.f32 1.442695, %v737_v53 }
 0x2b3   : > { %1555 = vpow2.f32 %v744_v54 }
 0x2b8   : > { %v1552_v55 = vpop.eup %1551 }
 0x2b9   : > { %v749_v56 = vsel %vm721_vm2, %v1552_v55, 0.0 }
 0x2ba   : > { %750 = vadd.xlane.f32.xlu0 %v749_v56 }
 0x2bc   : > { %v1554_v57 = vpop.eup %1553 }
 0x2bd   : > { %v752_v58 = vsel %vm721_vm2, %v1554_v57, 0.0 }
 0x2be   : > { %753 = vadd.xlane.f32.xlu1 %v752_v58 }
 0x2c0   : > { %v1556_v59 = vpop.eup %1555 }
 0x2c1   : > { %v755_v60 = vsel %vm721_vm2, %v1556_v59, 0.0 }
 0x2c2   : > { %756 = vadd.xlane.f32.xlu0 %v755_v60 }
 0x2cf   : > { %418 = vrot.lane.b32.xlu1 %v1841_v16, %s1687_s6 }
 0x2d8   : > { %415 = vrot.lane.b32.xlu0 %v1841_v16, %s1685_s26  ;;  %v1090_v16 = vld [vmem:[%s2081_s2 + $0x58] sm:$0xff] }
 0x2db   : > { %v748_v61 = vpop.xlane.xlu1 %747 }
 0x2dc   : > { %1557 = vrcp.f32 %v748_v61 }
 0x2e9   : > { %v1558_v62 = vpop.eup %1557 }
 0x2ea   : > { %v762_v63 = vmul.f32 %v1558_v62, %v1550_v43 }
 0x2ec   : > { %1440 = vmatmul.mubr.msk.f32.vlgmr.msra.gmra.mxu0 %vm721_vm2, %v762_v63  ;;  %766 = vst.msk [vmem:[%s1887_s11] sm:$0xff] %vm721_vm2, %v762_v63 }
 0x2ed   : > { %1449 = vmatprep.mubr.msk.f32.mxu0 %vm1684_vm1, %v1683_v4 }
 0x343   : > { %v751_v0 = vpop.xlane.xlu0 %750 }
 0x344   : > { %1559 = vrcp.f32 %v751_v0 }
 0x347   : > { %v754_v1 = vpop.xlane.xlu1 %753 }
 0x348   : > { %1561 = vrcp.f32 %v754_v1 }
 0x34b   : > { %v757_v2 = vpop.xlane.xlu0 %756  ;;  %v419_v7 = vpop.permute.xlu1 %418 }
 0x34c   : > { %1563 = vrcp.f32 %v757_v2 }
 0x34f   : > { %v416_v3 = vpop.permute.xlu0 %415 }
 0x350   : > { %1448 = vmatpush3.msra.mxu0 %v416_v3 }
 0x351   : > { %v1560_v5 = vpop.eup %1559  ;;  %1457 = vmatprep.subr.mxu0 %v1683_v4 }
 0x352   : > { %v763_v6 = vmul.f32 %v1560_v5, %v1552_v55 }
 0x354   : > { %1445 = vmatmul.mubr.msk.f32.vlgmr.msra.gmra.mxu1 %vm721_vm2, %v763_v6  ;;  %767 = vst.msk [vmem:[%s1887_s11 + $0x8] sm:$0xff] %vm721_vm2, %v763_v6 }
 0x355   : > { %v1562_v8 = vpop.eup %1561  ;;  %1453 = vmatpush3.msra.mxu1 %v419_v7  ;;  %1454 = vmatprep.mubr.msk.f32.mxu1 %vm1684_vm1, %v1683_v4 }
 0x356   : > { %v764_v9 = vmul.f32 %v1562_v8, %v1554_v57 }
 0x358   : > { %1450 = vmatmul.mubr.msk.f32.vlgmr.msra.gmra.mxu0 %vm721_vm2, %v764_v9  ;;  %768 = vst.msk [vmem:[%s1887_s11 + $0x10] sm:$0xff] %vm721_vm2, %v764_v9 }
 0x359   : > { %v1564_v10 = vpop.eup %1563  ;;  %1489 = vmatprep.mubr.msk.f32.mxu0 %vm1684_vm1, %v1683_v4  ;;  %1458 = vmatpush3.msra.mxu0 %v1094_v12 }
 0x35a   : > { %v765_v11 = vmul.f32 %v1564_v10, %v1556_v59  ;;  %1459 = vmatprep.subr.mxu0 %v1683_v4 }
 0x35b   : > { %1460 = vmatpush3.msra.mxu0 %v1093_v13 }
 0x35c   : > { %1455 = vmatmul.mubr.msk.f32.vlgmr.msra.gmra.mxu1 %vm721_vm2, %v765_v11  ;;  %769 = vst.msk [vmem:[%s1887_s11 + $0x18] sm:$0xff] %vm721_vm2, %v765_v11  ;;  %1461 = vmatprep.subr.mxu0 %v1683_v4 }
 0x35d   : > { %1462 = vmatpush3.msra.mxu0 %v1092_v14 }
 0x35e   : > { %1463 = vmatprep.subr.mxu0 %v1683_v4 }
 0x35f   : > { %1464 = vmatpush3.msra.mxu0 %v1091_v15 }
 0x360   : > { %1465 = vmatprep.subr.mxu0 %v1683_v4 }
 0x361   : > { %1466 = vmatpush3.msra.mxu0 %v1090_v16 }
 0x362   : > { %1467 = vmatprep.subr.mxu0 %v1683_v4 }
 0x363   : > { %1468 = vmatpush3.msra.mxu0 %v1089_v17 }
 0x364   : > { %1469 = vmatprep.subr.mxu0 %v1683_v4 }
 0x365   : > { %1470 = vmatpush3.msra.mxu0 %v1088_v18 }
 0x366   : > { %1471 = vmatprep.subr.mxu0 %v1683_v4 }
 0x367   : > { %1472 = vmatpush3.msra.mxu0 %v1087_v19 }
 0x368   : > { %1473 = vmatprep.subr.mxu0 %v1683_v4 }
 0x369   : > { %1474 = vmatpush3.msra.mxu0 %v1086_v21 }
 0x36a   : > { %1475 = vmatprep.subr.mxu0 %v1683_v4 }
 0x36b   : > { %1476 = vmatpush3.msra.mxu0 %v1085_v23 }
 0x36c   : > { %1477 = vmatprep.subr.mxu0 %v1683_v4 }
 0x36d   : > { %1478 = vmatpush3.msra.mxu0 %v1084_v24 }
 0x36e   : > { %1479 = vmatprep.subr.mxu0 %v1683_v4 }
 0x36f   : > { %1480 = vmatpush3.msra.mxu0 %v1083_v25 }
 0x370   : > { %1481 = vmatprep.subr.mxu0 %v1683_v4 }
 0x371   : > { %1482 = vmatpush3.msra.mxu0 %v1082_v26 }
 0x372   : > { %1483 = vmatprep.subr.mxu0 %v1683_v4 }
 0x373   : > { %1484 = vmatpush3.msra.mxu0 %v1081_v27 }
 0x374   : > { %1485 = vmatprep.subr.mxu0 %v1683_v4 }
 0x375   : > { %1486 = vmatpush3.msra.mxu0 %v1080_v28 }
 0x376   : > { %1487 = vmatprep.subr.mxu0 %v1683_v4 }
 0x377   : > { %1488 = vmatpush3.msra.mxu0 %v1079_v29 }
 0x3ac   : > { %v839_v20 = vpop.f32.mrf.mxu0 }
 0x3ae   : > { %v1441_v22 = vpop.f32.mrf.mxu0 }
 0x414   : > { %v912_v30 = vpop.f32.mrf.mxu1 }
 0x415   : > { %1063 = vrot.lane.b32.xlu1 %v912_v30, %s1687_s6  ;;  %s1202_s6 = sshll.u32 %s1887_s11, 4  ;;  %s1688_s11 = smov [#allocation4]   ;;  %s1976_s6 = int_to_ptr.vmem [resolvable:$true] %s1202_s6 }
 0x416   : > { %v1446_v31 = vpop.f32.mrf.mxu1  ;;  %s1565_s16 = scalar_lea.vmem %s1976_s6, 512  ;;  %s1569_s17 = sshll.u32 %s1688_s11, 4  ;;  %s1570_s17 = int_to_ptr.vmem [resolvable:$false] %s1569_s17 }
 0x417   : > { %p1566_p11 = scmp.ne.s32.totalorder %s1976_s6, %s1565_s16  ;;  %s1571_s25 = scalar_lea.vmem %s1570_s17, 1024 }
 0x418   : > { %v985_v32 = vpop.f32.mrf.mxu0  ;;  %p1572_p0 = scmp.lt.s32.totalorder %s1976_s6, %s1570_s17  ;;  %p1573_p1 = scmp.lt.s32.totalorder %s1571_s25, %s1565_s16 }
 0x419   : > { %1067 = vrot.lane.b32.xlu0 %v985_v32, %s1685_s26  ;;  %s1979_s26 = sshll.u32 %s1745_s22, 7  ;;  %p1567_p12 = pnand %p1566_p11, %p1764_p5 }
 0x41a   : > { %v1451_v33 = vpop.f32.mrf.mxu0  ;;  %s1985_s14 = scalar_lea.hbm %s2083_s4, %s1979_s26  ;;  %p1574_p2 = por %p1573_p1, %p1572_p0 }
 0x41b   : > { %p1568_p13 = pneg %p1567_p12 }
 0x41c   : > { %v1058_v34 = vpop.f32.mrf.mxu1 }
 0x41d   : > { %1071 = vrot.lane.b32.xlu1 %v1058_v34, %s1686_s30  ;;  %p1575_p3 = pnand %p1574_p2, %p1568_p13 }
 0x41e   : > { %v1456_v4 = vpop.f32.mrf.mxu1 }
 0x487   : > { %v1064_v35 = vpop.permute.xlu1 %1063 }
 0x488   : > { %v1074_v37 = vsel %vm251_vm0, %v839_v20, %v1064_v35 }
 0x48b   : > { %v1068_v36 = vpop.permute.xlu0 %1067 }
 0x48c   : > { %v1076_v38 = vsel %vm1075_vm3, %v1074_v37, %v1068_v36 }
 0x48f   : > { %v1072_v39 = vpop.permute.xlu1 %1071 }
 0x490   : > { %v1078_v40 = vsel %vm1077_vm4, %v1076_v38, %v1072_v39 }
 0x491   : > { %1490 = vmatmul.mubr.f32.vlgmr.msra.gmra.mxu0 %v1078_v40 }
 0x492   : > { %1578 = shalt.err (!%p1575_p3)
}
 0x493   : > { %s1579_s22 = scalar_lea.hbm %s1985_s14, 512  ;;  %s1583_s30 = scalar_lea.hbm %s2083_s4, 1024 }
 0x494   : > { %p1580_p4 = scmp.ne.s32.totalorder %s1985_s14, %s1579_s22  ;;  %p1584_p9 = scmp.lt.s32.totalorder %s1985_s14, %s2083_s4 }
 0x495   : > { %p1585_p10 = scmp.lt.s32.totalorder %s1583_s30, %s1579_s22 }
 0x496   : > { %p1581_p7 = pnand %p1580_p4, %p1764_p5 }
 0x497   : > { %p1586_p11 = por %p1585_p10, %p1584_p9 }
 0x498   : > { %p1582_p8 = pneg %p1581_p7 }
 0x49a   : > { %p1587_p12 = pnand %p1586_p11, %p1582_p8 }
 0x49c   : > { %1590 = shalt.err (!%p1587_p12)
}
 0x49d   : > { %s1689_s16 = smov 128   ;;  %s1690_s17 = smov 256  }
 0x49e   : > { %s1691_s25 = smov 8   ;;  %s1216_s13 = scalar_lea.hbm %s2084_s5, %s1979_s26 }
 0x49f   : > { %1493 = dma.vmem_to_hbm [thread:$0]  (%p1764_p5), %s1976_s6, 512, %s1985_s14, %s1987_s15, %s1689_s16, %s1690_s17, %s1691_s25  }
 0x4a0   : > { %s1218_s22 = sshll.u32 %s1866_s9, 4  ;;  %s1692_s11 = smov [#allocation6]   ;;  %s1219_s22 = int_to_ptr.vmem [resolvable:$true] %s1218_s22 }
 0x4a1   : > { %s1591_s30 = scalar_lea.vmem %s1219_s22, 128  ;;  %s1595_s23 = sshll.u32 %s1692_s11, 4  ;;  %s1596_s23 = int_to_ptr.vmem [resolvable:$false] %s1595_s23 }
 0x4a2   : > { %p1592_p13 = scmp.ne.s32.totalorder %s1219_s22, %s1591_s30  ;;  %s1597_s8 = scalar_lea.vmem %s1596_s23, 256 }
 0x4a3   : > { %p1598_p2 = scmp.lt.s32.totalorder %s1219_s22, %s1596_s23  ;;  %p1599_p3 = scmp.lt.s32.totalorder %s1597_s8, %s1591_s30 }
 0x4a4   : > { %p1593_p0 = pnand %p1592_p13, %p1764_p5 }
 0x4a5   : > { %p1600_p4 = por %p1599_p3, %p1598_p2 }
 0x4a6   : > { %p1594_p1 = pneg %p1593_p0 }
 0x4a8   : > { %p1601_p7 = pnand %p1600_p4, %p1594_p1 }
 0x4aa   : > { %1604 = shalt.err (!%p1601_p7)
}
 0x4ab   : > { %s1605_s6 = scalar_lea.hbm %s1216_s13, 128  ;;  %s1609_s16 = scalar_lea.hbm %s2084_s5, 256 }
 0x4ac   : > { %p1606_p8 = scmp.ne.s32.totalorder %s1216_s13, %s1605_s6  ;;  %p1610_p11 = scmp.lt.s32.totalorder %s1216_s13, %s2084_s5 }
 0x4ad   : > { %p1611_p12 = scmp.lt.s32.totalorder %s1609_s16, %s1605_s6 }
 0x4ae   : > { %p1607_p9 = pnand %p1606_p8, %p1764_p5 }
 0x4af   : > { %p1612_p13 = por %p1611_p12, %p1610_p11 }
 0x4b0   : > { %p1608_p10 = pneg %p1607_p9 }
 0x4b2   : > { %p1613_p0 = pnand %p1612_p13, %p1608_p10 }
 0x4b4   : > { %1616 = shalt.err (!%p1613_p0)
}
 0x4b5   : > { %1494 = dma.vmem_to_hbm [thread:$0]  (%p1764_p5), %s1219_s22, 128, %s1216_s13, %s1987_s15  }
 0x4b6   : > { %s2089_s23 = sshll.u32 %s1861_s7, 3  ;;  %s2034_s11 = scalar_lea.hbm %s2082_s3, %s1979_s26 }
 0x4b7   : > { %s219_s8 = scalar_lea.vmem [#allocation2], %s2089_s23  ;;  %s1167_s6 = scalar_lea.sflag [#allocation3], %s1861_s7 }
 0x4b8   : > { %s1190_s10 = sshll.u32 %s219_s8, 4  ;;  %s1693_s15 = smov [#allocation2]   ;;  %s2036_s10 = int_to_ptr.vmem [resolvable:$true] %s1190_s10 }
 0x4b9   : > { %s1617_s9 = scalar_lea.vmem %s2036_s10, 128  ;;  %s1621_s13 = sshll.u32 %s1693_s15, 4  ;;  %s1622_s13 = int_to_ptr.vmem [resolvable:$false] %s1621_s13 }
 0x4ba   : > { %p1618_p1 = scmp.ne.s32.totalorder %s2036_s10, %s1617_s9  ;;  %s1623_s26 = scalar_lea.vmem %s1622_s13, 256 }
 0x4bb   : > { %p1624_p4 = scmp.lt.s32.totalorder %s2036_s10, %s1622_s13  ;;  %p1625_p7 = scmp.lt.s32.totalorder %s1623_s26, %s1617_s9 }
 0x4bc   : > { %p1619_p2 = pnand %p1618_p1, %p1764_p5 }
 0x4bd   : > { %p1626_p8 = por %p1625_p7, %p1624_p4 }
 0x4be   : > { %p1620_p3 = pneg %p1619_p2 }
 0x4c0   : > { %p1627_p9 = pnand %p1626_p8, %p1620_p3 }
 0x551   : > { %v1161_v41 = vpop.f32.mrf.mxu0 }
 0x552   : > { %1165 = vst.msk [vmem:[%s219_s8] sm:$0xff] %vm251_vm0, %v1161_v41 }
 0x553   : > { %v1491_v42 = vpop.f32.mrf.mxu0 }
 0x554   : > { %1630 = shalt.err (!%p1627_p9)
}
 0x555   : > { %s1631_s22 = scalar_lea.hbm %s2034_s11, 128  ;;  %s1635_s16 = scalar_lea.hbm %s2082_s3, 256 }
 0x556   : > { %p1632_p10 = scmp.ne.s32.totalorder %s2034_s11, %s1631_s22  ;;  %p1636_p13 = scmp.lt.s32.totalorder %s2034_s11, %s2082_s3 }
 0x557   : > { %p1637_p0 = scmp.lt.s32.totalorder %s1635_s16, %s1631_s22 }
 0x558   : > { %p1633_p11 = pnand %p1632_p10, %p1764_p5 }
 0x559   : > { %p1638_p1 = por %p1637_p0, %p1636_p13 }
 0x55a   : > { %p1634_p12 = pneg %p1633_p11 }
 0x55c   : > { %p1639_p2 = pnand %p1638_p1, %p1634_p12 }
 0x55e   : > { %1642 = shalt.err (!%p1639_p2)
}
 0x55f   : > { %1492 = dma.vmem_to_hbm [thread:$0]  (%p1764_p5), %s2036_s10, 128, %s2034_s11, %s1167_s6  }
 0x560 PF: > { %p1508_p3 = scmp.ge.s32.totalorder %s1681_s21, 2  ;;  %s1230_s23 = sand.u32 1, %s1669_s18  }
 0x561   : > { %s1231_s8 = scalar_lea.sflag [#allocation3], %s1230_s23 }
 0x562   : > { %p1499_p4 = pnand %p1508_p3, %p1768_p6 }
 0x564   : > { %p1500_p7 = pneg %p1499_p4 }
 0x566   : > { %1660 = dma.done.wait (%p1500_p7), %s1231_s8, 128  }
 0x567   : > { %1662 = vsyncadd (%p1500_p7), %s1231_s8, 4294967168  ;;  %s2090_s12 = sadd.s32 4294967294, %s1681_s21  }
 0x568   : > { %s1239_s30 = sand.u32 1, %s2090_s12  }
 0x569   : > { %s1240_s9 = scalar_lea.sflag [#allocation5], %s1239_s30 }
 0x56a   : > { %1664 = dma.done.wait (%p1500_p7), %s1240_s9, 640  }
 0x56b   : > { %1666 = vsyncadd (%p1500_p7), %s1240_s9, 4294966656  ;;  %p19_p5 = scmp.ge.s32.totalorder %s1749_s24, 4   ;;  %s2091_s18 = smov %s1673_s19 }
 0x56c   : > { %s2092_s19 = smov %s1677_s20  ;;  %s2093_s20 = smov %s1762_s27 }
 0x56d   : > { %s2094_s21 = smov %s1749_s24  ;;  %21 = sbr.rel (!%p19_p5) target bundleno = 5 (0x5), region = 99 }
 0x572   :  { %1254 = vsyncpa [#allocation3], 1 }
 0x573   :  { %1256 = vsyncpa [#allocation3 + $0x1], 1 }
 0x574   :  { %1257 = vsyncpa [#allocation5], 1 }
 0x575   :  { %1259 = vsyncpa [#allocation5 + $0x1], 1 }

</bundles_post_ra>
